<compile_context>
chip_gen: v6e
topology: v6e:2x2x1
jax: 0.10.0
libtpu: 0.0.40
codegen_flags: <defaults>
</compile_context>

<pallas_src>
import functools

import jax
import jax.numpy as jnp
from jax.experimental import pallas as pl
from jax.experimental.pallas import tpu as pltpu

LOG2 = 0.6931471805599453
PI = 3.141592653589793


def _ssp(x):
    # FastShiftedSoftplus.forward: log1p(exp(-|x|)) + clamp_min(x, 0) - log(2)
    return jnp.log1p(jnp.exp(-jnp.abs(x))) + jnp.maximum(x, 0.0) - LOG2


def _vmem_spec():
    # whole-array block resident in VMEM (shapes here are tiny)
    return pl.BlockSpec(memory_space=pltpu.MemorySpace.VMEM)


# ----------------------------------------------------------------------------
# Kernel 0: standalone FastShiftedSoftplus (the literal module spec)
# ----------------------------------------------------------------------------
def _ssp_kernel(x_ref, o_ref):
    o_ref[...] = _ssp(x_ref[...])


def fast_shifted_softplus(x):
    return pl.pallas_call(
        _ssp_kernel,
        out_shape=jax.ShapeDtypeStruct(x.shape, x.dtype),
        in_specs=[_vmem_spec()],
        out_specs=_vmem_spec(),
    )(x)


# ----------------------------------------------------------------------------
# Kernel 1: masked pairwise distances (KNNInteractionGraph) — pure VPU
# ----------------------------------------------------------------------------
def _dist_kernel(pos_ref, post_ref, br_ref, bc_ref, out_ref, *, cutoff):
    n = br_ref.shape[0]
    # d^2 via three broadcast FMAs instead of a K=3 MXU contraction.
    d2 = jnp.zeros((n, n), jnp.float32)
    for c in range(3):
        diff = pos_ref[:, c:c + 1] - post_ref[c:c + 1, :]        # [N,1]-[1,N]
        d2 = d2 + diff * diff
    d = jnp.sqrt(jnp.maximum(d2, 0.0))
    rows = jax.lax.broadcasted_iota(jnp.int32, (n, n), 0)
    cols = jax.lax.broadcasted_iota(jnp.int32, (n, n), 1)
    mask = (rows == cols) | (br_ref[...] != bc_ref[...]) | (d > cutoff)
    out_ref[...] = jnp.where(mask, jnp.float32(cutoff), d)


def masked_pairwise_dist(pos, batch, cutoff):
    n = pos.shape[0]
    kern = functools.partial(_dist_kernel, cutoff=float(cutoff))
    return pl.pallas_call(
        kern,
        out_shape=jax.ShapeDtypeStruct((n, n), jnp.float32),
        in_specs=[_vmem_spec()] * 4,
        out_specs=_vmem_spec(),
    )(pos, pos.T,
      batch.reshape(n, 1).astype(jnp.int32),
      batch.reshape(1, n).astype(jnp.int32))


# ----------------------------------------------------------------------------
# Kernel 2: fused InteractionBlock
#   Gaussian smearing -> filter MLP -> cosine cutoff -> CFConv.lin1 ->
#   neighbour gather (one-hot matmul) -> message * filter -> k-sum (segment
#   matmul) -> CFConv.lin2 -> SSP -> InteractionBlock.lin -> residual.
# All intermediates live in VMEM/vregs; nothing round-trips HBM.
# ----------------------------------------------------------------------------
def _interaction_kernel(h_ref, d_ref, gat_ref, seg_ref, offset_ref,
                        wm1_ref, bm1_ref, wm2_ref, bm2_ref,
                        cw1_ref, cw2_ref, cb2_ref, lw_ref, lb_ref,
                        out_ref, *, coeff, pi_over_cutoff, cutoff):
    h = h_ref[...]                                               # [N, F]
    d = d_ref[...]                                               # [E, 1]

    # edge filter: Gaussian smearing -> MLP (SSP) -> cosine cutoff
    ea = jnp.exp(coeff * (d - offset_ref[...]) ** 2)             # [E, G]
    w = jnp.dot(ea, wm1_ref[...],
                preferred_element_type=jnp.float32) + bm1_ref[...]
    w = _ssp(w)
    w = jnp.dot(w, wm2_ref[...],
                preferred_element_type=jnp.float32) + bm2_ref[...]   # [E, F]
    c = 0.5 * (jnp.cos(d * pi_over_cutoff) + 1.0)                # [E, 1]
    # explicit mask: padded / masked edges carry d == cutoff exactly.
    w = jnp.where(d < cutoff, w * c, 0.0)                        # [E, F]

    # CFConv
    xl = jnp.dot(h, cw1_ref[...],
                 preferred_element_type=jnp.float32)             # lin1  [N, F]
    xl_nb = jnp.dot(gat_ref[...], xl,
                    preferred_element_type=jnp.float32)          # gather [E, F]
    agg = jnp.dot(seg_ref[...], xl_nb * w,
                  preferred_element_type=jnp.float32)            # k-sum  [N, F]
    y = jnp.dot(agg, cw2_ref[...],
                preferred_element_type=jnp.float32) + cb2_ref[...]   # lin2
    y = _ssp(y)
    y = jnp.dot(y, lw_ref[...],
                preferred_element_type=jnp.float32) + lb_ref[...]    # lin
    out_ref[...] = h + y                                         # residual


def interaction_block(h, d_col, gather_oh, seg_sum, offset, blk, cutoff,
                      num_gaussians):
    n, f = h.shape
    g = num_gaussians
    delta = float(cutoff) / (num_gaussians - 1)
    kern = functools.partial(_interaction_kernel,
                             coeff=-0.5 / (delta * delta),
                             pi_over_cutoff=float(PI / cutoff),
                             cutoff=float(cutoff))
    return pl.pallas_call(
        kern,
        out_shape=jax.ShapeDtypeStruct((n, f), jnp.float32),
        in_specs=[_vmem_spec()] * 14,
        out_specs=_vmem_spec(),
        input_output_aliases={0: 0},        # residual h updated in place
    )(h, d_col, gather_oh, seg_sum, offset.reshape(1, g),
      blk["mlp_w1"], blk["mlp_b1"].reshape(1, f),
      blk["mlp_w2"], blk["mlp_b2"].reshape(1, f),
      blk["conv_w1"], blk["conv_w2"], blk["conv_b2"].reshape(1, f),
      blk["lin_w"], blk["lin_b"].reshape(1, f))


# ----------------------------------------------------------------------------
# Kernel 3: readout MLP + per-molecule sum (scatter-add as one-hot matmul)
# ----------------------------------------------------------------------------
def _readout_kernel(h_ref, w1_ref, b1_ref, w2_ref, b2_ref, onehot_ref, out_ref):
    y = jnp.dot(h_ref[...], w1_ref[...],
                preferred_element_type=jnp.float32) + b1_ref[...]
    y = _ssp(y)
    e = jnp.dot(y, w2_ref[...],
                preferred_element_type=jnp.float32) + b2_ref[...]    # [N, 1]
    out_ref[...] = jnp.dot(onehot_ref[...], e,
                           preferred_element_type=jnp.float32)       # [B, 1]


def readout(h, w1, b1, w2, b2, onehot):
    nb = onehot.shape[0]
    return pl.pallas_call(
        _readout_kernel,
        out_shape=jax.ShapeDtypeStruct((nb, 1), jnp.float32),
        in_specs=[_vmem_spec()] * 6,
        out_specs=_vmem_spec(),
    )(h, w1, b1.reshape(1, -1), w2, b2.reshape(1, 1), onehot)


# ----------------------------------------------------------------------------
# Full SchNet forward (inference path)
# ----------------------------------------------------------------------------
def schnet_forward(params, z, pos, ptr, *, k, cutoff, num_gaussians,
                   num_molecules):
    n = z.shape[0]
    z = z.astype(jnp.int32)
    pos = pos.astype(jnp.float32)

    # ptr_to_batch: mark molecule starts, force batch[0]=0, cumsum.
    batch = jnp.zeros((n,), jnp.int32).at[ptr].set(1, mode="drop")
    batch = batch.at[0].set(0)
    batch = jnp.cumsum(batch)

    # atomic embedding lookup (row gather — XLA glue)
    h = jnp.take(params["embedding"], z, axis=0)                 # [N, F]

    # KNN interaction graph
    pdist = masked_pairwise_dist(pos, batch, cutoff)             # [N, N] (Pallas)
    # TODO(synk): top-k neighbour selection has no clean Pallas equivalent; done in XLA.
    neg_d, idx = jax.lax.top_k(-pdist, k)                        # [N, k]
    d = -neg_d                                                   # edge_weight
    e = n * k
    d_col = d.reshape(e, 1)

    # Graph-constant one-hot gather matrix [E, N] and segment-sum matrix [N, E]
    # built once; the per-layer gather / k-reduction run in-kernel as matmuls.
    idx_flat = idx.reshape(e)
    gather_oh = (idx_flat[:, None] ==
                 jnp.arange(n, dtype=jnp.int32)[None, :]).astype(jnp.float32)
    seg_sum = ((jnp.arange(e, dtype=jnp.int32)[None, :] // k) ==
               jnp.arange(n, dtype=jnp.int32)[:, None]).astype(jnp.float32)

    offset = jnp.linspace(0.0, float(cutoff), num_gaussians).astype(jnp.float32)

    for blk in params["interactions"]:
        h = interaction_block(h, d_col, gather_oh, seg_sum, offset, blk,
                              cutoff, num_gaussians)             # [N, F]

    onehot = (batch[None, :] == jnp.arange(num_molecules)[:, None]
              ).astype(jnp.float32)                              # [B, N]
    out = readout(h, params["lin1_w"], params["lin1_b"],
                  params["lin2_w"], params["lin2_b"], onehot)    # [B, 1]
    return out.reshape(-1)                                       # .view(-1)


# ----------------------------------------------------------------------------
# Deterministic parameter initialization (shapes match pyg SchNet __init__)
# ----------------------------------------------------------------------------
def init_params(key, num_features, num_interactions, num_gaussians):
    f = num_features

    def lin(k_, fan_in, fan_out):
        k1, k2 = jax.random.split(k_)
        w = jax.random.normal(k1, (fan_in, fan_out), jnp.float32) / jnp.sqrt(fan_in)
        b = jax.random.normal(k2, (fan_out,), jnp.float32) * 0.01
        return w, b

    keys = jax.random.split(key, 3 + num_interactions)
    params = {"embedding": jax.random.normal(keys[0], (100, f), jnp.float32) * 0.1}

    inter = []
    for i in range(num_interactions):
        ks = jax.random.split(keys[1 + i], 5)
        mw1, mb1 = lin(ks[0], num_gaussians, f)
        mw2, mb2 = lin(ks[1], f, f)
        cw1, _ = lin(ks[2], f, f)          # CFConv.lin1 has no bias
        cw2, cb2 = lin(ks[3], f, f)
        lw, lb = lin(ks[4], f, f)
        inter.append(dict(mlp_w1=mw1, mlp_b1=mb1, mlp_w2=mw2, mlp_b2=mb2,
                          conv_w1=cw1, conv_w2=cw2, conv_b2=cb2,
                          lin_w=lw, lin_b=lb))
    params["interactions"] = inter

    w1, b1 = lin(keys[1 + num_interactions], f, f // 2)
    w2, b2 = lin(keys[2 + num_interactions], f // 2, 1)
    params.update(lin1_w=w1, lin1_b=b1, lin2_w=w2, lin2_b=b2)
    return params


if __name__ == "__main__":
    NUM_FEATURES = 32
    NUM_INTERACTIONS = 2
    NUM_GAUSSIANS = 16
    K = 8
    CUTOFF = 6.0
    N_ATOMS = 24          # two molecules: 10 atoms + 14 atoms
    NUM_MOLECULES = 2

    key = jax.random.PRNGKey(0)
    kz, kp, kw, kx = jax.random.split(key, 4)
    z = jax.random.randint(kz, (N_ATOMS,), 1, 10, dtype=jnp.int32)
    pos = jax.random.uniform(kp, (N_ATOMS, 3), jnp.float32, 0.0, 4.0)
    ptr = jnp.array([0, 10, N_ATOMS], dtype=jnp.int32)

    params = init_params(kw, NUM_FEATURES, NUM_INTERACTIONS, NUM_GAUSSIANS)

    # 1) standalone FastShiftedSoftplus kernel (the literal module spec)
    x = jax.random.normal(kx, (8, 256), jnp.float32) * 4.0
    y = jax.block_until_ready(fast_shifted_softplus(x))
    y_ref = jnp.logaddexp(x, 0.0) - LOG2      # softplus(x) - log(2)
    assert jnp.allclose(y, y_ref, atol=1e-5, rtol=1e-5)

    # 2) full SchNet forward (fused interaction blocks)
    fwd = jax.jit(functools.partial(
        schnet_forward, k=K, cutoff=CUTOFF, num_gaussians=NUM_GAUSSIANS,
        num_molecules=NUM_MOLECULES))
    out = jax.block_until_ready(fwd(params, z, pos, ptr))
    assert out.shape == (NUM_MOLECULES,)
    assert jnp.all(jnp.isfinite(out))
    print("KERNEL_OK")
</pallas_src>

<mosaic_0001>
module attributes {stable_mosaic.version = 11 : i64} {
  func.func @_ssp_kernel(%arg0: memref<8x256xf32, #tpu.memory_space<vmem>>, %arg1: memref<8x256xf32, #tpu.memory_space<vmem>>) attributes {dimension_semantics = [], scalar_prefetch = 0 : i64, scratch_operands = 0 : i64, tpu.core_type = #tpu.core_type<tc>} {
    %c0 = arith.constant 0 : index
    %c0_0 = arith.constant 0 : index
    %0 = vector.load %arg0[%c0, %c0_0] : memref<8x256xf32, #tpu.memory_space<vmem>>, vector<8x256xf32>
    %1 = math.absf %0 : vector<8x256xf32>
    %cst = arith.constant 0.000000e+00 : f32
    %2 = vector.broadcast %cst : f32 to vector<8x256xf32>
    %3 = arith.subf %2, %1 : vector<8x256xf32>
    %4 = math.exp %3 : vector<8x256xf32>
    %5 = math.log1p %4 : vector<8x256xf32>
    %cst_1 = arith.constant 0.000000e+00 : f32
    %6 = vector.broadcast %cst_1 : f32 to vector<8x256xf32>
    %7 = arith.maximumf %0, %6 : vector<8x256xf32>
    %8 = arith.addf %5, %7 : vector<8x256xf32>
    %cst_2 = arith.constant 0.693147182 : f32
    %9 = vector.broadcast %cst_2 : f32 to vector<8x256xf32>
    %10 = arith.subf %8, %9 : vector<8x256xf32>
    %c0_3 = arith.constant 0 : index
    %c0_4 = arith.constant 0 : index
    %11 = vector.load %arg1[%c0_3, %c0_4] : memref<8x256xf32, #tpu.memory_space<vmem>>, vector<8x256xf32>
    tpu.vector_store %arg1[%c0_3, %c0_4], %10 {strides = array<i32>} : memref<8x256xf32, #tpu.memory_space<vmem>>, vector<8x256xf32>,
    return
  }
}

</mosaic_0001>

<bundles_post_ra>
// kernel: tpu_custom_call.1
= control target key start
LH: loop header
LB: loop body
LE: loop exit
PB: predicated region body
PF: predicated region fallthrough
CT: control target
= control target key end

     0   :  { %6 = vsyncpa [#allocation3], 0  ;;  %s146_s0 = inlined_call_operand.hbm [shape: f32[8,256], index: 0, kind: input, shape index: {}]   ;;  %s147_s1 = inlined_call_operand.hbm [shape: f32[8,256], index: 1, kind: output, shape index: {}]  }
   0x1   :  { %7 = vsyncpa [#allocation4], 0  ;;  %s128_s6 = smov [#allocation2]  }
   0x2   :  { %s14_s7 = sshll.u32 %s128_s6, 4  ;;  %s15_s7 = int_to_ptr.vmem [resolvable:$true] %s14_s7 }
   0x3   :  { %s92_s8 = scalar_lea.vmem %s15_s7, 256  ;;  %p97_p1 = scmp.lt.s32.totalorder %s15_s7, %s15_s7 }
   0x4   :  { %p93_p0 = scmp.ne.s32.totalorder %s15_s7, %s92_s8  ;;  %p98_p2 = scmp.lt.s32.totalorder %s92_s8, %s92_s8 }
   0x6   :  { %p99_p3 = por %p98_p2, %p97_p1 }
   0x8   :  { %p100_p4 = pnand %p99_p3, %p93_p0 }
   0xa   :  { %103 = shalt.err (!%p100_p4)
}
   0xb   :  { %17 = dma.hbm_to_vmem [thread:$0]  %s146_s0, 256, %s15_s7, [#allocation3]  }
   0xc   :  { %124 = dma.done.wait [#allocation3], 256  }
   0xd   :  { %125 = vsyncadd [#allocation3], 4294967040  ;;  %v21_v0 = vld [vmem:[#allocation2] sm:$0xff]  ;;  %v22_v1 = vld [vmem:[#allocation2 + $0x8] sm:$0xff]  ;;  %s129_s0 = smov [#allocation5]  }
   0xe   :  { %v23_v2 = vand.u32 2147483647, %v21_v0  ;;  %v24_v3 = vand.u32 2147483647, %v22_v1  ;;  %v49_v20 = vmax.f32 %v21_v0, 0.0  ;;  %v50_v24 = vmax.f32 %v22_v1, 0.0 }
   0xf   :  { %s63_s11 = sshll.u32 %s129_s0, 4  ;;  %s64_s11 = int_to_ptr.vmem [resolvable:$true] %s63_s11 }
  0x10   :  { %v25_v4 = vsub.f32 0.0, %v23_v2  ;;  %v26_v5 = vsub.f32 0.0, %v24_v3  ;;  %s104_s12 = scalar_lea.vmem %s64_s11, 256  ;;  %p109_p6 = scmp.lt.s32.totalorder %s64_s11, %s64_s11 }
  0x11   :  { %p105_p5 = scmp.ne.s32.totalorder %s64_s11, %s104_s12  ;;  %p110_p7 = scmp.lt.s32.totalorder %s104_s12, %s104_s12 }
  0x12   :  { %v27_v6 = vmul.f32 1.442695, %v25_v4  ;;  %v29_v7 = vmul.f32 1.442695, %v26_v5 }
  0x13   :  { %p111_p8 = por %p110_p7, %p109_p6 }
  0x14   :  { %76 = vpow2.f32 %v27_v6 }
  0x15   :  { %78 = vpow2.f32 %v29_v7  ;;  %p112_p9 = pnand %p111_p8, %p105_p5 }
  0x21   :  { %v77_v8 = vpop.eup %76 }
  0x22   :  { %v79_v9 = vpop.eup %78  ;;  %v31_v10 = vadd.f32 1.0, %v77_v8  ;;  %v34_v12 = vmul.f32 -0.5, %v77_v8  ;;  %v37_v15 = vand.u32 2147483647, %v77_v8 }
  0x23   :  { %v40_v11 = vadd.f32 1.0, %v79_v9  ;;  %v43_v13 = vmul.f32 -0.5, %v79_v9  ;;  %v46_v17 = vand.u32 2147483647, %v79_v9 }
  0x24   :  { %80 = vlog2.f32 %v31_v10  ;;  %v35_v14 = vadd.f32 1.0, %v34_v12  ;;  %vm38_vm0 = vcmp.lt.f32.partialorder %v37_v15, 0.0004427343 }
  0x25   :  { %82 = vlog2.f32 %v40_v11  ;;  %v44_v16 = vadd.f32 1.0, %v43_v13  ;;  %vm47_vm1 = vcmp.lt.f32.partialorder %v46_v17, 0.0004427343 }
  0x26   :  { %v36_v18 = vmul.f32 %v77_v8, %v35_v14 }
  0x27   :  { %v45_v21 = vmul.f32 %v79_v9, %v44_v16 }
  0x31   :  { %v81_v19 = vpop.eup %80 }
  0x32   :  { %v83_v22 = vpop.eup %82  ;;  %v33_v23 = vmul.f32 0.6931472, %v81_v19 }
  0x33   :  { %v42_v25 = vmul.f32 0.6931472, %v83_v22 }
  0x34   :  { %v39_v26 = vsel %vm38_vm0, %v36_v18, %v33_v23 }
  0x35   :  { %v51_v27 = vadd.f32 %v49_v20, %v39_v26  ;;  %v48_v28 = vsel %vm47_vm1, %v45_v21, %v42_v25 }
  0x36   :  { %v52_v29 = vadd.f32 %v50_v24, %v48_v28 }
  0x37   :  { %v72_v30 = vadd.f32 -0.6931472, %v51_v27 }
  0x38   :  { %v73_v31 = vadd.f32 -0.6931472, %v52_v29 }
  0x39   :  { %55 = vst [vmem:[#allocation5] sm:$0xff] %v72_v30 }
  0x3a   :  { %56 = vst [vmem:[#allocation5 + $0x8] sm:$0xff] %v73_v31 }
  0x3b   :  { %115 = shalt.err (!%p112_p9)
}
  0x3c   :  { %66 = dma.vmem_to_hbm [thread:$0]  %s64_s11, 256, %s147_s1, [#allocation4]  }
  0x3d   :  { %126 = dma.done.wait [#allocation4], 256  }
  0x3e   :  { %127 = vsyncadd [#allocation4], 4294967040 }
  0x3f   :  { %70 = vsyncpa [#allocation3], 1 }
  0x40   :  { %71 = vsyncpa [#allocation4], 1 }

</bundles_post_ra>
